<compile_context>
chip_gen: v7x
topology: tpu7x:2x2x1
jax: 0.10.0
libtpu: 0.0.40
codegen_flags: <defaults>
</compile_context>

<pallas_src>
import functools

import jax
import jax.numpy as jnp
from jax.experimental import pallas as pl
from jax.experimental.pallas import tpu as pltpu


# ----------------------------- sizing helpers -----------------------------

def _rup(x, m):
    return ((x + m - 1) // m) * m


def _sublane(dtype):
    return {4: 8, 2: 16, 1: 32}.get(jnp.dtype(dtype).itemsize, 8)


def _tile_bytes(rows, cols, dtype):
    """VMEM footprint of a (rows, cols) array after (sublane, 128) tile padding."""
    itemsize = jnp.dtype(dtype).itemsize
    return _rup(max(rows, 1), _sublane(dtype)) * _rup(max(cols, 1), 128) * itemsize


def _per_elem_vmem(P, H, D, in_dtype, out_dtype):
    """Tile-padded in+out VMEM bytes for ONE batch element."""
    b = _tile_bytes(P, D, in_dtype) + _tile_bytes(H, D, in_dtype)          # px, hx
    b += _tile_bytes(1, P, jnp.float32) + _tile_bytes(1, H, jnp.float32)   # additive masks
    b += _tile_bytes(P, 4 * D, out_dtype) + _tile_bytes(H, 4 * D, out_dtype)  # m_p, m_h
    return b


def _auto_batch_block(B, P, H, D, in_dtype, out_dtype, target_bytes=3 << 20):
    """Batch elements per grid step: amortize step overhead, keep >=2 steps per v7x TC."""
    per = max(1, _per_elem_vmem(P, H, D, in_dtype, out_dtype))
    cap = max(1, target_bytes // per)
    if B >= 4:
        cap = min(cap, B // 4)      # >= 4 grid steps -> >= 2 per v7x TensorCore
    elif B >= 2:
        cap = min(cap, B // 2)
    cap = max(1, min(int(cap), B))

    sub = max(_sublane(in_dtype), _sublane(out_dtype))

    def ok(bt):
        return (B % bt == 0
                and ((bt * P) % sub == 0 or bt * P == B * P)
                and ((bt * H) % sub == 0 or bt * H == B * H))

    for bt in range(cap, 0, -1):          # largest aligned divisor under the cap
        if ok(bt):
            return bt
    for bt in range(cap + 1, B + 1):      # relax step-count cap if alignment forces it
        if ok(bt):
            return bt
    return B                              # full-array block: always legal


def _vmem_limit_bytes(bt, P, H, D, in_dtype, out_dtype, unroll):
    io = bt * _per_elem_vmem(P, H, D, in_dtype, out_dtype)
    f32 = jnp.float32
    # per-unrolled-iteration f32 temporaries: e, e_t, w_b, w_a, hats, packed rows
    tmp = (2 * _tile_bytes(P, H, f32) + 2 * _tile_bytes(H, P, f32)
           + _tile_bytes(P, D, f32) + _tile_bytes(H, D, f32)
           + _tile_bytes(P, 4 * D, f32) + _tile_bytes(H, 4 * D, f32))
    need = 2 * io + max(1, unroll) * tmp + (8 << 20)   # 2x for double-buffered blocks
    try:
        info = pltpu.get_tpu_info()
        phys = int(getattr(info, "vmem_capacity_bytes", 128 << 20) or (128 << 20))
    except Exception:
        phys = 128 << 20
    # ~48 MiB usable on v7x (64 MiB physical), ~100 MiB cap on v5e/v6e (128 MiB physical)
    cap = min(phys - (16 << 20), 100 << 20)
    cap = max(cap, 16 << 20)
    return int(min(max(need, 32 << 20), cap))


# ------------------------------- the kernel -------------------------------

def _cast(x, dt):
    return x if x.dtype == jnp.dtype(dt) else x.astype(dt)


def _local_interface_kernel(px_ref, hx_ref, padd_ref, hadd_ref, mp_ref, mh_ref,
                            *, bt, P, H, D, mxu_dtype, unroll):
    # px_ref: (bt*P, D)    hx_ref: (bt*H, D)      (input dtype)
    # padd_ref: (bt, 1, P) f32 additive mask {0, -1e30}
    # hadd_ref: (bt, 1, H) f32 additive mask {0, -1e30}
    # mp_ref: (bt*P, 4D)   mh_ref: (bt*H, 4D)     (output dtype)

    def _store_enhanced(out_ref, row0, L, x_f, x_hat):
        rows = pl.ds(row0, L)
        if D % 128 == 0:
            # Lane-aligned segment widths -> four plain (unmasked) stores,
            # no concatenated temporary in VMEM.
            out_ref[rows, 0 * D:1 * D] = x_f.astype(out_ref.dtype)
            out_ref[rows, 1 * D:2 * D] = x_hat.astype(out_ref.dtype)
            out_ref[rows, 2 * D:3 * D] = (x_f - x_hat).astype(out_ref.dtype)
            out_ref[rows, 3 * D:4 * D] = (x_f * x_hat).astype(out_ref.dtype)
        else:
            # 4D % 128 == 0 (guaranteed by the wrapper): pack once, then a
            # single lane-dense (L, 4D) store.
            row = jnp.concatenate([x_f, x_hat, x_f - x_hat, x_f * x_hat], axis=-1)
            out_ref[rows, :] = row.astype(out_ref.dtype)

    def body(b, carry):
        prow = pl.multiple_of(b * P, P)
        hrow = pl.multiple_of(b * H, H)
        px_in = px_ref[pl.ds(prow, P), :]           # (P, D)
        hx_in = hx_ref[pl.ds(hrow, H), :]           # (H, D)
        p_add = padd_ref[b]                         # (1, P) f32 additive
        h_add = hadd_ref[b]                         # (1, H) f32 additive

        # MXU operands in mxu_dtype; elementwise copies in f32 (no double cast).
        px_m = _cast(px_in, mxu_dtype)
        hx_m = _cast(hx_in, mxu_dtype)
        px_f = _cast(px_in, jnp.float32)
        hx_f = _cast(hx_in, jnp.float32)

        # e[i, j] = <px_i, hx_j>: contract D against D, no transposed operands.
        e = jax.lax.dot_general(px_m, hx_m, (((1,), (1,)), ((), ())),
                                preferred_element_type=jnp.float32)        # (P, H)
        # e_t == e.T, computed directly on the MXU so BOTH softmax reductions
        # run along the lane axis.  (On v5e with large P/H an XLU transpose of
        # `e` would be preferable; at ESIM-sized tiles the MXU has ample slack.)
        e_t = jax.lax.dot_general(hx_m, px_m, (((1,), (1,)), ((), ())),
                                  preferred_element_type=jnp.float32)      # (H, P)

        # --- softmax over H (lane axis); normalize after the matmul ---
        s_b = e + h_add
        w_b = jnp.exp(s_b - jnp.max(s_b, axis=-1, keepdims=True))          # (P, H)
        inv_b = pl.reciprocal(jnp.sum(w_b, axis=-1, keepdims=True), approx=True)
        px_hat = jax.lax.dot_general(w_b.astype(mxu_dtype), hx_m,
                                     (((1,), (0,)), ((), ())),
                                     preferred_element_type=jnp.float32) * inv_b

        # --- softmax over P, along the lane axis of e_t ---
        s_a = e_t + p_add
        w_a = jnp.exp(s_a - jnp.max(s_a, axis=-1, keepdims=True))          # (H, P)
        inv_a = pl.reciprocal(jnp.sum(w_a, axis=-1, keepdims=True), approx=True)
        hx_hat = jax.lax.dot_general(w_a.astype(mxu_dtype), px_m,
                                     (((1,), (0,)), ((), ())),
                                     preferred_element_type=jnp.float32) * inv_a

        # enhancement_of_local_inference_information
        _store_enhanced(mp_ref, prow, P, px_f, px_hat)
        _store_enhanced(mh_ref, hrow, H, hx_f, hx_hat)
        return carry

    jax.lax.fori_loop(0, bt, body, 0, unroll=unroll)


# -------------------------------- wrapper ----------------------------------

def local_interface(px, hx, p_mask, h_mask, *, mxu_dtype=jnp.bfloat16,
                    out_dtype=None, batch_block=None, target_bytes=3 << 20):
    """px: (B,P,D), hx: (B,H,D) float; p_mask: (B,P), h_mask: (B,H) bool (True = pad)."""
    B, P, D = px.shape
    H = hx.shape[1]
    out_dtype = jnp.dtype(px.dtype) if out_dtype is None else jnp.dtype(out_dtype)

    # Lane padding of D: keep every output store lane-dense.  Zero columns are
    # mathematically inert through e, the softmaxes and the weighted sums.
    if D % 128 == 0 or (4 * D) % 128 == 0:
        Dp = D
    else:
        Dp = _rup(D, 128)
    if Dp != D:
        pad = ((0, 0), (0, 0), (0, Dp - D))
        px_k = jnp.pad(px, pad)
        hx_k = jnp.pad(hx, pad)
    else:
        px_k, hx_k = px, hx

    # Additive masks precomputed in the wrapper (finite -1e30 so a fully-masked
    # row degrades to uniform weights instead of NaN; identical to -inf whenever
    # at least one position is unmasked -- exp underflows to exactly 0).
    neg = jnp.float32(-1e30)
    p_add = jnp.where(p_mask, neg, jnp.float32(0.0)).astype(jnp.float32).reshape(B, 1, P)
    h_add = jnp.where(h_mask, neg, jnp.float32(0.0)).astype(jnp.float32).reshape(B, 1, H)

    bt = (batch_block if batch_block is not None
          else _auto_batch_block(B, P, H, Dp, px_k.dtype, out_dtype,
                                 target_bytes=target_bytes))
    assert B % bt == 0, (B, bt)
    unroll = max(1, min(bt, 4))

    # Flatten batch into the row axis for denser sublanes / bigger DMAs.
    px2 = px_k.reshape(B * P, Dp)
    hx2 = hx_k.reshape(B * H, Dp)

    kernel = functools.partial(_local_interface_kernel, bt=bt, P=P, H=H, D=Dp,
                               mxu_dtype=mxu_dtype, unroll=unroll)

    in_item = jnp.dtype(px_k.dtype).itemsize
    out_item = jnp.dtype(out_dtype).itemsize
    cost = pl.CostEstimate(
        flops=8 * B * P * H * Dp,                  # 4 MXU matmuls of P*H*D MACs each
        transcendentals=2 * B * P * H,             # the two exps
        bytes_accessed=(B * (P + H) * Dp * in_item + 4 * B * (P + H)
                        + 4 * B * (P + H) * Dp * out_item),
    )

    mp2, mh2 = pl.pallas_call(
        kernel,
        out_shape=(jax.ShapeDtypeStruct((B * P, 4 * Dp), out_dtype),
                   jax.ShapeDtypeStruct((B * H, 4 * Dp), out_dtype)),
        grid_spec=pltpu.PrefetchScalarGridSpec(
            num_scalar_prefetch=0,
            grid=(B // bt,),
            in_specs=[
                pl.BlockSpec((bt * P, Dp), lambda g: (g, 0)),
                pl.BlockSpec((bt * H, Dp), lambda g: (g, 0)),
                pl.BlockSpec((bt, 1, P), lambda g: (g, 0, 0)),
                pl.BlockSpec((bt, 1, H), lambda g: (g, 0, 0)),
            ],
            out_specs=[
                pl.BlockSpec((bt * P, 4 * Dp), lambda g: (g, 0)),
                pl.BlockSpec((bt * H, 4 * Dp), lambda g: (g, 0)),
            ],
        ),
        compiler_params=pltpu.CompilerParams(
            dimension_semantics=("parallel",),
            vmem_limit_bytes=_vmem_limit_bytes(bt, P, H, Dp, px_k.dtype,
                                               out_dtype, unroll),
        ),
        cost_estimate=cost,
    )(px2, hx2, p_add, h_add)

    m_p = mp2.reshape(B, P, 4 * Dp)
    m_h = mh2.reshape(B, H, 4 * Dp)
    if Dp != D:
        m_p = jnp.concatenate([m_p[..., i * Dp:i * Dp + D] for i in range(4)], axis=-1)
        m_h = jnp.concatenate([m_h[..., i * Dp:i * Dp + D] for i in range(4)], axis=-1)
    return m_p, m_h


# ------------------------------ verification -------------------------------

def _reference(px, hx, p_mask, h_mask):
    # plain-JAX mirror of the PyTorch forward
    e = jnp.einsum('bpd,bhd->bph', px, hx)
    p_add = jnp.where(p_mask, -jnp.inf, 0.0)
    h_add = jnp.where(h_mask, -jnp.inf, 0.0)
    wb = jax.nn.softmax(e + h_add[:, None, :], axis=2)
    px_hat = jnp.einsum('bph,bhd->bpd', wb, hx)
    wa = jax.nn.softmax(e + p_add[:, :, None], axis=1)
    hx_hat = jnp.einsum('bph,bpd->bhd', wa, px)
    m_p = jnp.concatenate([px, px_hat, px - px_hat, px * px_hat], axis=-1)
    m_h = jnp.concatenate([hx, hx_hat, hx - hx_hat, hx * hx_hat], axis=-1)
    return m_p, m_h


if __name__ == "__main__":
    B, P, H, D = 4, 8, 16, 32
    key = jax.random.PRNGKey(0)
    k1, k2, k3, k4 = jax.random.split(key, 4)
    px = jax.random.normal(k1, (B, P, D), dtype=jnp.float32)
    hx = jax.random.normal(k2, (B, H, D), dtype=jnp.float32)

    # padding masks (True = padded position); no row is fully masked
    p_lens = jnp.array([P, 6, 3, P])
    h_lens = jnp.array([H, 12, 5, 9])
    p_mask = jnp.arange(P)[None, :] >= p_lens[:, None]   # (B, P) bool
    h_mask = jnp.arange(H)[None, :] >= h_lens[:, None]   # (B, H) bool

    ref_p, ref_h = _reference(px, hx, p_mask, h_mask)

    # 1) f32-MXU path (only the EUP approx-reciprocal differs from the reference)
    m_p, m_h = local_interface(px, hx, p_mask, h_mask, mxu_dtype=jnp.float32)
    jax.block_until_ready((m_p, m_h))
    assert m_p.shape == (B, P, 4 * D) and m_h.shape == (B, H, 4 * D)
    assert jnp.allclose(m_p, ref_p, atol=2e-2, rtol=2e-2)
    assert jnp.allclose(m_h, ref_h, atol=2e-2, rtol=2e-2)

    # 2) bf16-MXU fast path; compare against a reference fed bf16-rounded inputs
    m_p16, m_h16 = local_interface(px, hx, p_mask, h_mask, mxu_dtype=jnp.bfloat16)
    jax.block_until_ready((m_p16, m_h16))
    ref_p16, ref_h16 = _reference(px.astype(jnp.bfloat16).astype(jnp.float32),
                                  hx.astype(jnp.bfloat16).astype(jnp.float32),
                                  p_mask, h_mask)
    assert jnp.allclose(m_p16, ref_p16, atol=1e-1, rtol=1e-1)
    assert jnp.allclose(m_h16, ref_h16, atol=1e-1, rtol=1e-1)

    # 3) bf16 outputs (halved writeback of the dominant HBM traffic)
    m_pb, m_hb = local_interface(px, hx, p_mask, h_mask, out_dtype=jnp.bfloat16)
    jax.block_until_ready((m_pb, m_hb))
    assert m_pb.dtype == jnp.bfloat16 and m_hb.dtype == jnp.bfloat16
    assert jnp.allclose(m_pb.astype(jnp.float32), ref_p16, atol=1.5e-1, rtol=1.5e-1)
    assert jnp.allclose(m_hb.astype(jnp.float32), ref_h16, atol=1.5e-1, rtol=1.5e-1)

    # 4) non-aligned D exercises the lane-padding path (D=48 -> padded to 128)
    B2, P2, H2, D2 = 2, 8, 8, 48
    px2 = jax.random.normal(k3, (B2, P2, D2), dtype=jnp.float32)
    hx2 = jax.random.normal(k4, (B2, H2, D2), dtype=jnp.float32)
    p_mask2 = jnp.arange(P2)[None, :] >= jnp.array([P2, 5])[:, None]
    h_mask2 = jnp.arange(H2)[None, :] >= jnp.array([H2, 3])[:, None]
    ref_p2, ref_h2 = _reference(px2, hx2, p_mask2, h_mask2)
    m_p2, m_h2 = local_interface(px2, hx2, p_mask2, h_mask2, mxu_dtype=jnp.float32)
    jax.block_until_ready((m_p2, m_h2))
    assert m_p2.shape == (B2, P2, 4 * D2) and m_h2.shape == (B2, H2, 4 * D2)
    assert jnp.allclose(m_p2, ref_p2, atol=2e-2, rtol=2e-2)
    assert jnp.allclose(m_h2, ref_h2, atol=2e-2, rtol=2e-2)

    print("KERNEL_OK")
</pallas_src>

<mosaic_0001>
module attributes {stable_mosaic.version = 11 : i64} {
  func.func @_local_interface_kernel(%arg0: i32, %arg1: memref<8x32xf32, #tpu.memory_space<vmem>>, %arg2: memref<16x32xf32, #tpu.memory_space<vmem>>, %arg3: memref<1x1x8xf32, #tpu.memory_space<vmem>>, %arg4: memref<1x1x16xf32, #tpu.memory_space<vmem>>, %arg5: memref<8x128xf32, #tpu.memory_space<vmem>>, %arg6: memref<16x128xf32, #tpu.memory_space<vmem>>) attributes {dimension_semantics = [#tpu.dimension_semantics<parallel>], iteration_bounds = array<i64: 4>, scalar_prefetch = 0 : i64, scratch_operands = 0 : i64, tpu.core_type = #tpu.core_type<tc>, window_params = [{transform_indices = @transform_0, window_bounds = array<i64: 8, 32>}, {transform_indices = @transform_1, window_bounds = array<i64: 16, 32>}, {transform_indices = @transform_2, window_bounds = array<i64: 1, 1, 8>}, {transform_indices = @transform_3, window_bounds = array<i64: 1, 1, 16>}, {transform_indices = @transform_4, window_bounds = array<i64: 8, 128>}, {transform_indices = @transform_5, window_bounds = array<i64: 16, 128>}]} {
    %c0_i32 = arith.constant 0 : i32
    %c8_i32 = arith.constant 8 : i32
    %0 = arith.muli %c0_i32, %c8_i32 : i32
    %1 = tpu.assume_multiple %0, 8 : i32
    %c16_i32 = arith.constant 16 : i32
    %2 = arith.muli %c0_i32, %c16_i32 : i32
    %3 = tpu.assume_multiple %2, 16 : i32
    %4 = arith.index_cast %1 : i32 to index
    %c0 = arith.constant 0 : index
    %5 = vector.load %arg1[%4, %c0] : memref<8x32xf32, #tpu.memory_space<vmem>>, vector<8x32xf32>
    %6 = arith.index_cast %3 : i32 to index
    %c0_0 = arith.constant 0 : index
    %7 = vector.load %arg2[%6, %c0_0] : memref<16x32xf32, #tpu.memory_space<vmem>>, vector<16x32xf32>
    %8 = arith.index_cast %c0_i32 : i32 to index
    %c0_1 = arith.constant 0 : index
    %c0_2 = arith.constant 0 : index
    %9 = vector.load %arg3[%8, %c0_1, %c0_2] : memref<1x1x8xf32, #tpu.memory_space<vmem>>, vector<1x1x8xf32>
    %10 = vector.shape_cast %9 : vector<1x1x8xf32> to vector<1x8xf32>
    %11 = arith.index_cast %c0_i32 : i32 to index
    %c0_3 = arith.constant 0 : index
    %c0_4 = arith.constant 0 : index
    %12 = vector.load %arg4[%11, %c0_3, %c0_4] : memref<1x1x16xf32, #tpu.memory_space<vmem>>, vector<1x1x16xf32>
    %13 = vector.shape_cast %12 : vector<1x1x16xf32> to vector<1x16xf32>
    %cst = arith.constant dense<0.000000e+00> : vector<8x16xf32>
    %14 = tpu.matmul %5, %7, %cst {dimension_numbers = #tpu.dot_dimension_numbers<[1], [1], [0], [0], [0, 0, 1, 0], [], []>} : vector<8x32xf32>, vector<16x32xf32>, vector<8x16xf32> -> vector<8x16xf32>
    %cst_5 = arith.constant dense<0.000000e+00> : vector<16x8xf32>
    %15 = tpu.matmul %7, %5, %cst_5 {dimension_numbers = #tpu.dot_dimension_numbers<[1], [1], [0], [0], [0, 0, 1, 0], [], []>} : vector<16x32xf32>, vector<8x32xf32>, vector<16x8xf32> -> vector<16x8xf32>
    %16 = vector.broadcast %13 : vector<1x16xf32> to vector<8x16xf32>
    %17 = arith.addf %14, %16 : vector<8x16xf32>
    %cst_6 = arith.constant dense<0xFF800000> : vector<8xf32>
    %18 = vector.multi_reduction <maximumf>, %17, %cst_6 [1] : vector<8x16xf32> to vector<8xf32>
    %19 = vector.shape_cast %18 : vector<8xf32> to vector<8x1xf32>
    %20 = vector.broadcast %19 : vector<8x1xf32> to vector<8x16xf32>
    %21 = arith.subf %17, %20 : vector<8x16xf32>
    %22 = math.exp %21 : vector<8x16xf32>
    %cst_7 = arith.constant dense<0.000000e+00> : vector<8xf32>
    %23 = vector.multi_reduction <add>, %22, %cst_7 [1] : vector<8x16xf32> to vector<8xf32>
    %24 = vector.shape_cast %23 : vector<8xf32> to vector<8x1xf32>
    %25 = tpu.reciprocal %24 {approx = true} : vector<8x1xf32> -> vector<8x1xf32>
    %cst_8 = arith.constant dense<0.000000e+00> : vector<8x32xf32>
    %26 = tpu.matmul %22, %7, %cst_8 {dimension_numbers = #tpu.dot_dimension_numbers<[1], [0], [0], [1], [0, 0, 1, 1], [], []>} : vector<8x16xf32>, vector<16x32xf32>, vector<8x32xf32> -> vector<8x32xf32>
    %27 = vector.broadcast %25 : vector<8x1xf32> to vector<8x32xf32>
    %28 = arith.mulf %26, %27 : vector<8x32xf32>
    %29 = vector.broadcast %10 : vector<1x8xf32> to vector<16x8xf32>
    %30 = arith.addf %15, %29 : vector<16x8xf32>
    %cst_9 = arith.constant dense<0xFF800000> : vector<16xf32>
    %31 = vector.multi_reduction <maximumf>, %30, %cst_9 [1] : vector<16x8xf32> to vector<16xf32>
    %32 = vector.shape_cast %31 : vector<16xf32> to vector<16x1xf32>
    %33 = vector.broadcast %32 : vector<16x1xf32> to vector<16x8xf32>
    %34 = arith.subf %30, %33 : vector<16x8xf32>
    %35 = math.exp %34 : vector<16x8xf32>
    %cst_10 = arith.constant dense<0.000000e+00> : vector<16xf32>
    %36 = vector.multi_reduction <add>, %35, %cst_10 [1] : vector<16x8xf32> to vector<16xf32>
    %37 = vector.shape_cast %36 : vector<16xf32> to vector<16x1xf32>
    %38 = tpu.reciprocal %37 {approx = true} : vector<16x1xf32> -> vector<16x1xf32>
    %cst_11 = arith.constant dense<0.000000e+00> : vector<16x32xf32>
    %39 = tpu.matmul %35, %5, %cst_11 {dimension_numbers = #tpu.dot_dimension_numbers<[1], [0], [0], [1], [0, 0, 1, 1], [], []>} : vector<16x8xf32>, vector<8x32xf32>, vector<16x32xf32> -> vector<16x32xf32>
    %40 = vector.broadcast %38 : vector<16x1xf32> to vector<16x32xf32>
    %41 = arith.mulf %39, %40 : vector<16x32xf32>
    %42 = arith.subf %5, %28 : vector<8x32xf32>
    %43 = arith.mulf %5, %28 : vector<8x32xf32>
    %44 = tpu.concatenate %5, %28, %42, %43 in 1 : vector<8x32xf32>, vector<8x32xf32>, vector<8x32xf32>, vector<8x32xf32> -> vector<8x128xf32>
    %45 = arith.index_cast %1 : i32 to index
    %c0_12 = arith.constant 0 : index
    %46 = vector.load %arg5[%45, %c0_12] : memref<8x128xf32, #tpu.memory_space<vmem>>, vector<8x128xf32>
    tpu.vector_store %arg5[%45, %c0_12], %44 {strides = array<i32>} : memref<8x128xf32, #tpu.memory_space<vmem>>, vector<8x128xf32>,
    %47 = arith.subf %7, %41 : vector<16x32xf32>
    %48 = arith.mulf %7, %41 : vector<16x32xf32>
    %49 = tpu.concatenate %7, %41, %47, %48 in 1 : vector<16x32xf32>, vector<16x32xf32>, vector<16x32xf32>, vector<16x32xf32> -> vector<16x128xf32>
    %50 = arith.index_cast %3 : i32 to index
    %c0_13 = arith.constant 0 : index
    %51 = vector.load %arg6[%50, %c0_13] : memref<16x128xf32, #tpu.memory_space<vmem>>, vector<16x128xf32>
    tpu.vector_store %arg6[%50, %c0_13], %49 {strides = array<i32>} : memref<16x128xf32, #tpu.memory_space<vmem>>, vector<16x128xf32>,
    %c1_i32 = arith.constant 1 : i32
    return
  }
  func.func @transform_0(%arg0: i32) -> (i32, i32) {
    %c0_i32 = arith.constant 0 : i32
    %c0_i32_0 = arith.constant 0 : i32
    return %arg0, %c0_i32 : i32, i32
  }
  func.func @transform_1(%arg0: i32) -> (i32, i32) {
    %c0_i32 = arith.constant 0 : i32
    %c0_i32_0 = arith.constant 0 : i32
    return %arg0, %c0_i32 : i32, i32
  }
  func.func @transform_2(%arg0: i32) -> (i32, i32, i32) {
    %c0_i32 = arith.constant 0 : i32
    %c0_i32_0 = arith.constant 0 : i32
    %c0_i32_1 = arith.constant 0 : i32
    return %arg0, %c0_i32, %c0_i32_0 : i32, i32, i32
  }
  func.func @transform_3(%arg0: i32) -> (i32, i32, i32) {
    %c0_i32 = arith.constant 0 : i32
    %c0_i32_0 = arith.constant 0 : i32
    %c0_i32_1 = arith.constant 0 : i32
    return %arg0, %c0_i32, %c0_i32_0 : i32, i32, i32
  }
  func.func @transform_4(%arg0: i32) -> (i32, i32) {
    %c0_i32 = arith.constant 0 : i32
    %c0_i32_0 = arith.constant 0 : i32
    return %arg0, %c0_i32 : i32, i32
  }
  func.func @transform_5(%arg0: i32) -> (i32, i32) {
    %c0_i32 = arith.constant 0 : i32
    %c0_i32_0 = arith.constant 0 : i32
    return %arg0, %c0_i32 : i32, i32
  }
}

</mosaic_0001>

<bundles_post_ra>
// kernel: tpu_custom_call.1
= control target key start
LH: loop header
LB: loop body
LE: loop exit
PB: predicated region body
PF: predicated region fallthrough
CT: control target
= control target key end

     0   :  { %11 = vsyncpa [#allocation3], 0  ;;  %s1336_s0 = inlined_call_operand.vmem [shape: f32[32,32], index: 0, kind: input, shape index: {}]   ;;  %s1337_s1 = inlined_call_operand.vmem [shape: f32[64,32], index: 1, kind: input, shape index: {}]   ;;  %s1338_s2 = inlined_call_operand.vmem [shape: f32[4,1,8], index: 2, kind: input, shape index: {}]   ;;  %s1339_s3 = inlined_call_operand.vmem [shape: f32[4,1,16], index: 3, kind: input, shape index: {}]   ;;  %s1340_s4 = inlined_call_operand.hbm [shape: f32[32,128], index: 4, kind: output, shape index: {0}]   ;;  %s1341_s5 = inlined_call_operand.hbm [shape: f32[64,128], index: 5, kind: output, shape index: {1}]  }
   0x1   :  { %13 = vsyncpa [#allocation3 + $0x1], 0 }
   0x2   :  { %14 = vsyncpa [#allocation5], 0 }
   0x3   :  { %16 = vsyncpa [#allocation5 + $0x1], 0  ;;  %s1126_s18 = smov 0   ;;  %s1128_s19 = smov 0  }
   0x4   :  { %s1130_s20 = smov 0   ;;  %s1132_s21 = smov 0  }
   0x5 LB: > { %s1147_s22 = sadd.s32 4294967295, %s1084_s21   ;;  %s855_s23 = sadd.s32 4294967294, %s1084_s21   ;;  %s1084_s21 = sphi %s1132_s21, %s1347_s21   ;;  %s1080_s20 = sphi %s1130_s20, %s1346_s20   ;;  %s1076_s19 = sphi %s1128_s19, %s1345_s19   ;;  %s1072_s18 = sphi %s1126_s18, %s1344_s18  }
   0x6   : > { %s1151_s24 = sadd.s32 1, %s1084_s21   ;;  %s133_s25 = sadd.s32 1, %s1080_s20 }
   0x7   : > { %s130_s26 = ssub.s32 %s1084_s21, %s1151_s24  ;;  %p143_p0 = scmp.ne.s32.totalorder %s1080_s20, %s1076_s19 }
   0x8   : > { %p131_p1 = scmp.eq.s32.totalorder %s130_s26, 0  ;;  %p144_p2 = scmp.eq.s32.totalorder %s1147_s22, 3 }
   0x9   : > { %p149_p3 = scmp.ne.s32.totalorder %s1076_s19, %s1072_s18  ;;  %p150_p4 = scmp.eq.s32.totalorder %s855_s23, 3 }
   0xa   : > { %s1162_s27 = scalar_select %p131_p1, %s1080_s20, %s133_s25  }
   0xb   : > { %p1164_p5 = por %p144_p2, %p143_p0  ;;  %p1168_p6 = por %p150_p4, %p149_p3 }
   0xc   : > { %p858_p7 = scmp.ge.s32.totalorder %s1084_s21, 1  ;;  %p222_p8 = scmp.lt.s32.totalorder %s1084_s21, 5 }
   0xe   : > { %p223_p9 = pnand %p858_p7, %p222_p8 }
   0xf   : > { %s862_s30 = sshll.u32 (!%p223_p9), %s1147_s22, 1  ;;  %p265_p10 = scmp.lt.s32.totalorder (!%p223_p9), %s1147_s22, 3  ;;  %v1086_v0 = vmov (!%p223_p9), 0.0|0.0   ;;  %vm1087_vm0 = vmmov (!%p223_p9), 0   ;;  %v1088_v1 = vmov (!%p223_p9), 0.0   ;;  %vm293_vm1 = vcmask (!%p223_p9), 261120  }
  0x10   : > { %226 = sbr.rel (%p223_p9) target bundleno = 1156 (0x484), region = 36  ;;  %919 = vmatprep.subr.bf16.mxu0 (!%p223_p9), %v1086_v0  ;;  %p270_p11 = scmp.lt.s32.totalorder (!%p223_p9), %s862_s30, 7  ;;  %899 = vmatprep.mubr.msk.f32.mxu0 (!%p223_p9), %vm1087_vm0, %v1088_v1  ;;  %vm921_vm2 = vmpackc.low (!%p223_p9), %vm293_vm1, %vm293_vm1  ;;  %vm373_vm3 = vcmask (!%p223_p9), 130048   ;;  %vm539_vm4 = vcmask (!%p223_p9), 64512   ;;  %vm658_vm5 = vcmask (!%p223_p9), 523264   ;;  %vm660_vm6 = vcmask (!%p223_p9), 785408  }
  0x11   : > { %923 = vmatprep.subr.bf16.mxu1 (!%p223_p9), %v1086_v0  ;;  %906 = vmatprep.mubr.msk.f32.mxu1 (!%p223_p9), %vm1087_vm0, %v1088_v1  ;;  %s1092_s23 = smov (!%p223_p9), [#allocation2]  }
  0x12   : > { %s994_s25 = sshll.u32 (!%p223_p9), %s1092_s23, 4  ;;  %s995_s25 = int_to_ptr.vmem [resolvable:$false] %s994_s25 }
  0x17   : > { %s1177_s6 = scalar_select %p265_p10, %s1147_s22, 3 }
  0x18   : > { %s1349_s30 = smov (!%p270_p11, %s862_s30), 7 }
  0x19   : > { %s861_s7 = sshll.u32 %s1177_s6, 3  ;;  %s863_s8 = sshll.u32 %s1349_s30, 3 }
  0x1a   : > { %s273_s11 = scalar_lea.vmem %s1337_s1, %s863_s8  ;;  %s268_s14 = scalar_lea.vmem %s1336_s0, %s861_s7 }
  0x1b   : > { %v1183_v2 = vld [vmem:[%s273_s11] sm:$0xff]  ;;  %v1185_v3 = vld [vmem:[%s273_s11 + $0x8] sm:$0xff]  ;;  %s280_s17 = scalar_lea.vmem %s1339_s3, %s1177_s6  ;;  %s277_s26 = scalar_lea.vmem %s1338_s2, %s1177_s6 }
  0x1c   : > { %v920_v4 = vpack.c.bf16 %v1185_v3, %v1183_v2  ;;  %v1194_v5 = vld [vmem:[%s268_s14] sm:$0xff]  ;;  %s1089_s30 = smov 64   ;;  %s1090_s6 = smov 32  }
  0x1d   : > { %v864_v6 = vld [vmem:[%s280_s17] ss:$0 sm:$0xff]  ;;  %s1091_s7 = smov 96   ;;  %s1231_s8 = sand.u32 1, %s1076_s19  }
  0x1e   : > { %922 = vmatpush3.bf16.xpose.msk.msra.mxu0 %vm921_vm2, %v920_v4  ;;  %925 = vmatpush3.bf16.msra.mxu1 %v920_v4  ;;  %v869_v17 = vld [vmem:[%s277_s26] ss:$0 sm:$0xff]  ;;  %s859_s9 = sshll.u32 %s1231_s8, 3  ;;  %s877_s11 = sshll.u32 %s1147_s22, 7 }
  0x1f   : > { %909 = vmatprep.subr.msk.mxu1 %vm293_vm1, %v1194_v5  ;;  %914 = vmatprep.subr.mxu0 %v1194_v5  ;;  %s257_s10 = scalar_lea.vmem [#allocation2], %s859_s9  ;;  %s1244_s14 = scalar_lea.hbm %s1340_s4, %s877_s11 }
  0x20   : > { %s718_s15 = sshll.u32 %s257_s10, 4  ;;  %s700_s16 = scalar_lea.sflag [#allocation3], %s1231_s8  ;;  %s1246_s15 = int_to_ptr.vmem [resolvable:$true] %s718_s15 }
  0x21   : > { %s990_s17 = scalar_lea.vmem %s1246_s15, 128  ;;  %s996_s26 = scalar_lea.vmem %s995_s25, 256 }
  0x22   : > { %p991_p12 = scmp.ne.s32.totalorder %s1246_s15, %s990_s17  ;;  %p997_p1 = scmp.lt.s32.totalorder %s1246_s15, %s995_s25 }
  0x23   : > { %p998_p2 = scmp.lt.s32.totalorder %s996_s26, %s990_s17 }
  0x24   : > { %p992_p13 = pnand %p991_p12, %p1164_p5 }
  0x25   : > { %900 = vmatmul.mubr.msk.f32.vlgmr.msra.gmra.mrb[0].mxu0 %vm293_vm1, %v1194_v5  ;;  %p999_p3 = por %p998_p2, %p997_p1 }
  0x26   : > { %915 = vmatpush3.msra.mxu0 %v1194_v5  ;;  %p993_p0 = pneg %p992_p13 }
  0x28   : > { %p1000_p4 = pnand %p999_p3, %p993_p0 }
  0xf8   : > { %v369_v7 = vpop.f32.mrb[0].mxu0 }
  0xf9   : > { %v370_v8 = vadd.f32 %v864_v6, %v369_v7  ;;  %v901_v9 = vpop.f32.mrb[1].mxu0 }
  0xfb   : > { %v374_v10 = vsel %vm373_vm3, %v370_v8, -inf }
  0xfc   : > { %375 = vmax.xlane.f32.xlu0 %v374_v10 }
 0x189   : > { %v376_v11 = vpop.xlane.xlu0 %375 }
 0x18a   : > { %v377_v12 = vsub.f32 %v370_v8, %v376_v11 }
 0x18c   : > { %v378_v13 = vmul.f32 1.442695, %v377_v12 }
 0x18e   : > { %978 = vpow2.f32 %v378_v13 }
 0x198   : > { %v979_v14 = vpop.eup %978 }
 0x199   : > { %907 = vmatmul.mubr.msk.f32.vlgmr.msra.gmra.mrb[0].mxu1 %vm373_vm3, %v979_v14  ;;  %v380_v24 = vsel %vm373_vm3, %v979_v14, 0.0 }
 0x19a   : > { %910 = vmatpush3.xpose.msk.msra.mxu1 %vm293_vm1, %v1194_v5  ;;  %911 = vmatprep.mubr.msk.f32.mxu1 %vm293_vm1, %v1183_v2 }
 0x19d   : > { %912 = vmatmul.mubr.msk.f32.vlgmr.msra.gmra.mrb[2].mxu1 %vm293_vm1, %v1185_v3 }
 0x26c   : > { %v453_v15 = vpop.f32.mrb[0].mxu1 }
 0x26d   : > { %v908_v16 = vpop.f32.mrb[1].mxu1 }
 0x270   : > { %v913_v18 = vpop.f32.mrb[2].mxu1 }
 0x271   : > { %v536_v19 = vadd.f32 %v913_v18, %v869_v17  ;;  %v530_v20 = vpop.f32.mrb[3].mxu1 }
 0x272   : > { %v531_v21 = vadd.f32 %v869_v17, %v530_v20 }
 0x273   : > { %v543_v22 = vsel %vm539_vm4, %v536_v19, -inf }
 0x274   : > { %544 = vmax.xlane.f32.xlu1 %v543_v22  ;;  %v540_v23 = vsel %vm539_vm4, %v531_v21, -inf }
 0x275   : > { %541 = vmax.xlane.f32.xlu0 %v540_v23 }
 0x278   : > { %381 = vadd.xlane.f32.xlu1 %v380_v24 }
 0x301   : > { %v545_v25 = vpop.xlane.xlu1 %544 }
 0x302   : > { %v547_v26 = vsub.f32 %v536_v19, %v545_v25  ;;  %v542_v27 = vpop.xlane.xlu0 %541 }
 0x303   : > { %v546_v28 = vsub.f32 %v531_v21, %v542_v27 }
 0x304   : > { %v550_v29 = vmul.f32 1.442695, %v547_v26 }
 0x305   : > { %v548_v30 = vmul.f32 1.442695, %v546_v28  ;;  %v382_v31 = vpop.xlane.xlu1 %381 }
 0x306   : > { %980 = vpow2.f32 %v550_v29 }
 0x307   : > { %982 = vpow2.f32 %v548_v30 }
 0x308   : > { %984 = vrcp.f32 %v382_v31 }
 0x310   : > { %v981_v32 = vpop.eup %980 }
 0x311   : > { %v983_v33 = vpop.eup %982  ;;  %v555_v34 = vsel %vm539_vm4, %v981_v32, 0.0 }
 0x312   : > { %916 = vmatprep.mubr.msk.f32.mxu0 %vm539_vm4, %v983_v33  ;;  %556 = vadd.xlane.f32.xlu1 %v555_v34  ;;  %v552_v35 = vsel %vm539_vm4, %v983_v33, 0.0  ;;  %v985_v36 = vpop.eup %984 }
 0x313   : > { %917 = vmatmul.mubr.msk.f32.vlgmr.msra.gmra.mrb[2].mxu0 %vm539_vm4, %v981_v32  ;;  %553 = vadd.xlane.f32.xlu0 %v552_v35  ;;  %v457_v37 = vmul.f32 %v985_v36, %v453_v15 }
 0x315   : > { %v643_v38 = vsub.f32 %v1194_v5, %v457_v37  ;;  %v644_v39 = vmul.f32 %v457_v37, %v1194_v5 }
 0x323   : > { %650 = vrot.lane.b32.xlu1 %v643_v38, %s1089_s30 }
 0x329   : > { %646 = vrot.lane.b32.xlu0 %v457_v37, %s1090_s6 }
 0x32d   : > { %654 = vrot.lane.b32.xlu0 %v644_v39, %s1091_s7 }
 0x39f   : > { %v557_v41 = vpop.xlane.xlu1 %556 }
 0x3a0   : > { %v554_v40 = vpop.xlane.xlu0 %553  ;;  %986 = vrcp.f32 %v557_v41 }
 0x3a1   : > { %988 = vrcp.f32 %v554_v40 }
 0x3a3   : > { %v651_v44 = vpop.permute.xlu1 %650 }
 0x3a4   : > { %v647_v42 = vpop.permute.xlu0 %646 }
 0x3a5   : > { %v657_v43 = vsel %vm293_vm1, %v1194_v5, %v647_v42 }
 0x3a6   : > { %v659_v46 = vsel %vm658_vm5, %v657_v43, %v651_v44 }
 0x3a8   : > { %v655_v45 = vpop.permute.xlu0 %654 }
 0x3a9   : > { %v661_v47 = vsel %vm660_vm6, %v659_v46, %v655_v45 }
 0x3aa   : > { %662 = vst [vmem:[%s257_s10] sm:$0xff] %v661_v47  ;;  %v987_v48 = vpop.eup %986 }
 0x3ab   : > { %v989_v50 = vpop.eup %988 }
 0x3e6   : > { %v918_v49 = vpop.f32.mrb[2].mxu0 }
 0x3e7   : > { %v642_v51 = vmul.f32 %v987_v48, %v918_v49  ;;  %v632_v52 = vpop.f32.mrb[3].mxu0 }
 0x3e8   : > { %v641_v53 = vmul.f32 %v989_v50, %v632_v52 }
 0x3e9   : > { %671 = vrot.lane.b32.xlu1 %v642_v51, %s1090_s6 }
 0x3ea   : > { %v663_v54 = vsub.f32 %v1183_v2, %v641_v53 }
 0x3ec   : > { %677 = vrot.lane.b32.xlu0 %v663_v54, %s1089_s30 }
 0x3ed   : > { %1003 = shalt.err (!%p1000_p4)
}
 0x3ee   : > { %s1004_s9 = scalar_lea.hbm %s1244_s14, 128  ;;  %s1008_s12 = scalar_lea.hbm %s1340_s4, 512 }
 0x3ef   : > { %p1005_p7 = scmp.ne.s32.totalorder %s1244_s14, %s1004_s9  ;;  %p1009_p10 = scmp.lt.u32.totalorder %s1244_s14, %s1340_s4 }
 0x3f0   : > { %p1010_p11 = scmp.lt.u32.totalorder %s1008_s12, %s1004_s9  ;;  %p1012_p13 = scmp.lt.u32.totalorder %s1004_s9, %s1244_s14 }
 0x3f1   : > { %p1006_p8 = pnand %p1005_p7, %p1164_p5 }
 0x3f2   : > { %p1011_p12 = por %p1010_p11, %p1009_p10 }
 0x3f3   : > { %p1007_p9 = pneg %p1006_p8 }
 0x3f4   : > { %p1013_p0 = por %p1012_p13, %p1011_p12 }
 0x3f6   : > { %p1014_p1 = pnand %p1013_p0, %p1007_p9 }
 0x3f8   : > { %1017 = shalt.err (!%p1014_p1)
}
 0x3f9   : > { %926 = dma.vmem_to_hbm [thread:$0]  (%p1164_p5), %s1246_s15, 128, %s1244_s14, %s700_s16   ;;  %669 = vrot.lane.b32.xlu1 %v641_v53, %s1090_s6  ;;  %v666_v55 = vmul.f32 %v642_v51, %v1185_v3  ;;  %v664_v56 = vsub.f32 %v1185_v3, %v642_v51  ;;  %v665_v57 = vmul.f32 %v641_v53, %v1183_v2 }
 0x3fa   : > { %s860_s17 = sshll.u32 %s1231_s8, 4  ;;  %s1093_s26 = smov [#allocation4]  }
 0x3fb   : > { %687 = vrot.lane.b32.xlu0 %v666_v55, %s1091_s7  ;;  %s264_s14 = scalar_lea.vmem [#allocation4], %s860_s17  ;;  %s1022_s9 = sshll.u32 %s1093_s26, 4  ;;  %s1023_s9 = int_to_ptr.vmem [resolvable:$false] %s1022_s9 }
 0x3fc   : > { %s731_s6 = sshll.u32 %s264_s14, 4  ;;  %s1024_s10 = scalar_lea.vmem %s1023_s9, 512  ;;  %s1286_s6 = int_to_ptr.vmem [resolvable:$true] %s731_s6 }
 0x3fd   : > { %679 = vrot.lane.b32.xlu1 %v664_v56, %s1089_s30  ;;  %s882_s30 = sshll.u32 %s1147_s22, 8  ;;  %s705_s22 = scalar_lea.sflag [#allocation5], %s1231_s8 }
 0x3fe   : > { %s1292_s16 = scalar_lea.hbm %s1341_s5, %s882_s30  ;;  %s1018_s25 = scalar_lea.vmem %s1286_s6, 256 }
 0x3ff   : > { %p1019_p2 = scmp.ne.s32.totalorder %s1286_s6, %s1018_s25  ;;  %p1025_p7 = scmp.lt.s32.totalorder %s1286_s6, %s1023_s9 }
 0x400   : > { %p1026_p8 = scmp.lt.s32.totalorder %s1024_s10, %s1018_s25 }
 0x401   : > { %685 = vrot.lane.b32.xlu1 %v665_v57, %s1091_s7  ;;  %p1020_p3 = pnand %p1019_p2, %p1164_p5 }
 0x402   : > { %p1027_p9 = por %p1026_p8, %p1025_p7 }
 0x403   : > { %p1021_p4 = pneg %p1020_p3 }
 0x405   : > { %p1028_p10 = pnand %p1027_p9, %p1021_p4 }
 0x45b   : > { %v672_v58 = vpop.permute.xlu1 %671 }
 0x45c   : > { %v692_v61 = vsel %vm293_vm1, %v1185_v3, %v672_v58 }
 0x45e   : > { %v678_v59 = vpop.permute.xlu0 %677 }
 0x46b   : > { %v670_v60 = vpop.permute.xlu1 %669 }
 0x46c   : > { %v691_v63 = vsel %vm293_vm1, %v1183_v2, %v670_v60 }
 0x46d   : > { %v688_v0 = vpop.permute.xlu0 %687  ;;  %v693_v3 = vsel %vm658_vm5, %v691_v63, %v678_v59 }
 0x46f   : > { %v680_v62 = vpop.permute.xlu1 %679 }
 0x470   : > { %v694_v1 = vsel %vm658_vm5, %v692_v61, %v680_v62 }
 0x471   : > { %v696_v4 = vsel %vm660_vm6, %v694_v1, %v688_v0 }
 0x472   : > { %698 = vst [vmem:[%s264_s14 + $0x8] sm:$0xff] %v696_v4 }
 0x473   : > { %v686_v5 = vpop.permute.xlu1 %685 }
 0x474   : > { %v695_v2 = vsel %vm660_vm6, %v693_v3, %v686_v5 }
 0x475   : > { %697 = vst [vmem:[%s264_s14] sm:$0xff] %v695_v2 }
 0x476   : > { %1031 = shalt.err (!%p1028_p10)
}
 0x477   : > { %s1032_s11 = scalar_lea.hbm %s1292_s16, 256  ;;  %s1036_s23 = scalar_lea.hbm %s1341_s5, 1024 }
 0x478   : > { %p1033_p11 = scmp.ne.s32.totalorder %s1292_s16, %s1032_s11  ;;  %p1037_p0 = scmp.lt.u32.totalorder %s1292_s16, %s1341_s5 }
 0x479   : > { %p1038_p1 = scmp.lt.u32.totalorder %s1036_s23, %s1032_s11  ;;  %p1040_p3 = scmp.lt.u32.totalorder %s1032_s11, %s1292_s16 }
 0x47a   : > { %p1034_p12 = pnand %p1033_p11, %p1164_p5 }
 0x47b   : > { %p1039_p2 = por %p1038_p1, %p1037_p0 }
 0x47c   : > { %p1035_p13 = pneg %p1034_p12 }
 0x47d   : > { %p1041_p4 = por %p1040_p3, %p1039_p2 }
 0x47f   : > { %p1042_p7 = pnand %p1041_p4, %p1035_p13 }
 0x481   : > { %1045 = shalt.err (!%p1042_p7)
}
 0x482   : > { %s1094_s30 = smov 128   ;;  %s1095_s7 = smov 8  }
 0x483   : > { %927 = dma.vmem_to_hbm [thread:$0]  (%p1164_p5), %s1286_s6, 256, %s1292_s16, %s705_s22, %s1094_s30, %s1094_s30, %s1095_s7  }
 0x484 PF: > { %p937_p8 = scmp.ge.s32.totalorder %s1084_s21, 2  ;;  %s746_s15 = sand.u32 1, %s1072_s18  }
 0x485   : > { %s747_s25 = scalar_lea.sflag [#allocation3], %s746_s15 }
 0x486   : > { %p931_p9 = pnand %p937_p8, %p1168_p6 }
 0x488   : > { %1063 = dma.done.wait (!%p931_p9), %s747_s25, 128  }
 0x489   : > { %1065 = vsyncadd (!%p931_p9), %s747_s25, 4294967168  ;;  %s756_s26 = scalar_lea.sflag [#allocation5], %s746_s15 }
 0x48a   : > { %1067 = dma.done.wait (!%p931_p9), %s756_s26, 256  }
 0x48b   : > { %1069 = vsyncadd (!%p931_p9), %s756_s26, 4294967040  ;;  %p19_p5 = scmp.ge.s32.totalorder %s1151_s24, 6   ;;  %s1344_s18 = smov %s1076_s19 }
 0x48c   : > { %s1345_s19 = smov %s1080_s20  ;;  %s1346_s20 = smov %s1162_s27 }
 0x48d   : > { %s1347_s21 = smov %s1151_s24  ;;  %21 = sbr.rel (!%p19_p5) target bundleno = 5 (0x5), region = 97 }
 0x494   :  { %761 = vsyncpa [#allocation3], 1 }
 0x495   :  { %763 = vsyncpa [#allocation3 + $0x1], 1 }
 0x496   :  { %764 = vsyncpa [#allocation5], 1 }
 0x497   :  { %766 = vsyncpa [#allocation5 + $0x1], 1 }

</bundles_post_ra>
